<compile_context>
chip_gen: v5e
topology: v5e:2x2
jax: 0.10.0
libtpu: 0.0.40
codegen_flags: <defaults>
</compile_context>

<pallas_src>
import jax
import jax.numpy as jnp
from jax.experimental import pallas as pl
from jax.experimental.pallas import tpu as pltpu

hidden_size = 5
input_size = 5
num_classes = 5
num_layers = 1
sequence_length = 6

# 8-sublane-aligned row offsets inside the packed parameter slab (40, 5):
ROW_WIH = 0    # W_ih^T : rows  0 .. I-1   (I, H)
ROW_WHH = 8    # W_hh^T : rows  8 .. 8+H-1 (H, H)
ROW_BRNN = 16  # b_ih + b_hh : row 16      (1, H)
ROW_WFC = 24   # W_fc^T : rows 24 .. 24+H-1 (H, C)   (C == H == 5 here)
ROW_BFC = 32   # b_fc   : row 32           (1, C)
SLAB_ROWS = 40


def rnn_fc_logsoftmax_kernel(x_ref, params_ref, out_ref):
    """tanh-RNN + Linear + log_softmax, fully VMEM-resident, no scratch.

    x_ref:      (T, I)        input sequence (B=1 squeezed host-side)
    params_ref: (40, H)       packed W_ih^T / W_hh^T / b_rnn / W_fc^T / b_fc
    out_ref:    (T, C)        per-timestep log-softmax outputs
    """
    T, I = x_ref.shape
    H = params_ref.shape[1]          # H == C == 5 for this module
    C = out_ref.shape[1]

    # --- Static, 8-aligned views into the packed parameter slab -----------
    wih_t = params_ref[ROW_WIH:ROW_WIH + I, :]          # (I, H)
    whh_t = params_ref[ROW_WHH:ROW_WHH + H, :]          # (H, H)
    b_rnn = params_ref[ROW_BRNN:ROW_BRNN + 1, :]        # (1, H)
    wfc_t = params_ref[ROW_WFC:ROW_WFC + H, :]          # (H, C)
    b_fc = params_ref[ROW_BFC:ROW_BFC + 1, :]           # (1, C)

    # --- Time-parallel prologue: one MXU matmul for the whole input
    #     projection, RNN bias folded in once for all timesteps. ----------
    xproj = (jnp.dot(x_ref[...], wih_t,
                     preferred_element_type=jnp.float32)
             + b_rnn)                                   # (T, H)

    # Rows of W_hh^T, pre-split once (static slices of a loaded value).
    whh_rows = [whh_t[k:k + 1, :] for k in range(H)]    # each (1, H)

    # --- Serial recurrence entirely on the VPU: 5 scaled-row adds instead
    #     of a (1,5)@(5,5) MXU round trip per step. h_0 = 0 so step 0 is
    #     just the tanh of the projected input. -----------------------------
    hs = [jnp.tanh(xproj[0:1, :])]                      # (1, H)
    for t in range(1, T):                               # T=6, static unroll
        h_prev = hs[-1]
        acc = xproj[t:t + 1, :]
        for k in range(H):
            acc = acc + h_prev[:, k:k + 1] * whh_rows[k]
        hs.append(jnp.tanh(acc))

    hs_all = jnp.concatenate(hs, axis=0)                # (T, H), in registers

    # --- Time-parallel epilogue: one FC matmul + stable log_softmax over
    #     all timesteps, one dense (T, C) store. --------------------------
    logits = (jnp.dot(hs_all, wfc_t,
                      preferred_element_type=jnp.float32)
              + b_fc)                                   # (T, C)
    m = jnp.max(logits, axis=-1, keepdims=True)
    s = logits - m
    lse = jnp.log(jnp.sum(jnp.exp(s), axis=-1, keepdims=True))
    out_ref[...] = s - lse


def rnn_forward(x, w_ih, w_hh, b_ih, b_hh, w_fc, b_fc):
    B, T, I = x.shape
    H = w_hh.shape[0]
    C = w_fc.shape[0]

    # Host-side (trace-time) layout prep.
    x2d = x.reshape(B * T, I).astype(jnp.float32)       # (T, I) since B=1

    # Pack all weights/biases (all have H == C == 5 columns) into one slab,
    # each parameter at an 8-row-aligned offset -> single parameter DMA and
    # tile-aligned static slices in-kernel.
    slab = jnp.zeros((SLAB_ROWS, H), jnp.float32)
    slab = slab.at[ROW_WIH:ROW_WIH + I, :].set(w_ih.T.astype(jnp.float32))
    slab = slab.at[ROW_WHH:ROW_WHH + H, :].set(w_hh.T.astype(jnp.float32))
    slab = slab.at[ROW_BRNN, :].set((b_ih + b_hh).astype(jnp.float32))
    slab = slab.at[ROW_WFC:ROW_WFC + H, :].set(w_fc.T.astype(jnp.float32))
    slab = slab.at[ROW_BFC, :].set(b_fc.astype(jnp.float32))

    vmem = pl.BlockSpec(memory_space=pltpu.MemorySpace.VMEM)
    out = pl.pallas_call(
        rnn_fc_logsoftmax_kernel,
        out_shape=jax.ShapeDtypeStruct((B * T, C), jnp.float32),
        in_specs=[vmem, vmem],
        out_specs=vmem,
    )(x2d, slab)
    # Matches torch: x.view(-1, num_classes) after the RNN, then fc + log_softmax.
    return out


def rnn_reference(x, w_ih, w_hh, b_ih, b_hh, w_fc, b_fc):
    B, T, I = x.shape
    H = w_hh.shape[0]
    h = jnp.zeros((B, H), jnp.float32)
    outs = []
    for t in range(T):
        h = jnp.tanh(x[:, t, :] @ w_ih.T + h @ w_hh.T + b_ih + b_hh)
        logits = h @ w_fc.T + b_fc
        outs.append(jax.nn.log_softmax(logits, axis=-1))
    return jnp.stack(outs, axis=1).reshape(B * T, -1)


if __name__ == "__main__":
    key = jax.random.PRNGKey(0)
    k1, k2, k3, k4, k5, k6 = jax.random.split(key, 6)

    # Deterministic parameter init (PyTorch-style uniform(-1/sqrt(H), 1/sqrt(H))).
    bound = 1.0 / jnp.sqrt(jnp.float32(hidden_size))
    w_ih = jax.random.uniform(k1, (hidden_size, input_size), jnp.float32, -bound, bound)
    w_hh = jax.random.uniform(k2, (hidden_size, hidden_size), jnp.float32, -bound, bound)
    b_ih = jax.random.uniform(k3, (hidden_size,), jnp.float32, -bound, bound)
    b_hh = jax.random.uniform(k4, (hidden_size,), jnp.float32, -bound, bound)
    w_fc = jax.random.uniform(k5, (num_classes, hidden_size), jnp.float32, -bound, bound)
    b_fc = jax.random.uniform(k6, (num_classes,), jnp.float32, -bound, bound)

    # Input: one-hot encoding of the script's sequence [[0, 1, 0, 2, 3, 3]],
    # shape (1, 6, 5) -> exactly what x.view(B, seq_len, input_size) expects.
    idx = jnp.array([[0, 1, 0, 2, 3, 3]], dtype=jnp.int32)
    x = jax.nn.one_hot(idx, input_size, dtype=jnp.float32)  # (1, 6, 5)

    out = rnn_forward(x, w_ih, w_hh, b_ih, b_hh, w_fc, b_fc)
    out = jax.block_until_ready(out)

    ref = rnn_reference(x, w_ih, w_hh, b_ih, b_hh, w_fc, b_fc)
    assert out.shape == (sequence_length, num_classes)
    assert jnp.allclose(out, ref, atol=1e-5, rtol=1e-5)

    print("KERNEL_OK")
</pallas_src>

<mosaic_0001>
module attributes {stable_mosaic.version = 11 : i64} {
  func.func @rnn_fc_logsoftmax_kernel(%arg0: memref<6x5xf32, #tpu.memory_space<vmem>>, %arg1: memref<40x5xf32, #tpu.memory_space<vmem>>, %arg2: memref<6x5xf32, #tpu.memory_space<vmem>>) attributes {dimension_semantics = [], scalar_prefetch = 0 : i64, scratch_operands = 0 : i64, tpu.core_type = #tpu.core_type<tc>} {
    %c0 = arith.constant 0 : index
    %c0_0 = arith.constant 0 : index
    %0 = vector.load %arg1[%c0, %c0_0] : memref<40x5xf32, #tpu.memory_space<vmem>>, vector<5x5xf32>
    %c8 = arith.constant 8 : index
    %c0_1 = arith.constant 0 : index
    %1 = vector.load %arg1[%c8, %c0_1] : memref<40x5xf32, #tpu.memory_space<vmem>>, vector<5x5xf32>
    %c16 = arith.constant 16 : index
    %c0_2 = arith.constant 0 : index
    %2 = vector.load %arg1[%c16, %c0_2] : memref<40x5xf32, #tpu.memory_space<vmem>>, vector<1x5xf32>
    %c24 = arith.constant 24 : index
    %c0_3 = arith.constant 0 : index
    %3 = vector.load %arg1[%c24, %c0_3] : memref<40x5xf32, #tpu.memory_space<vmem>>, vector<5x5xf32>
    %c32 = arith.constant 32 : index
    %c0_4 = arith.constant 0 : index
    %4 = vector.load %arg1[%c32, %c0_4] : memref<40x5xf32, #tpu.memory_space<vmem>>, vector<1x5xf32>
    %c0_5 = arith.constant 0 : index
    %c0_6 = arith.constant 0 : index
    %5 = vector.load %arg0[%c0_5, %c0_6] : memref<6x5xf32, #tpu.memory_space<vmem>>, vector<6x5xf32>
    %cst = arith.constant dense<0.000000e+00> : vector<6x5xf32>
    %6 = tpu.matmul %5, %0, %cst {dimension_numbers = #tpu.dot_dimension_numbers<[1], [0], [0], [1], [0, 0, 1, 1], [], []>} : vector<6x5xf32>, vector<5x5xf32>, vector<6x5xf32> -> vector<6x5xf32>
    %7 = vector.broadcast %2 : vector<1x5xf32> to vector<6x5xf32>
    %8 = arith.addf %6, %7 : vector<6x5xf32>
    %9 = vector.extract_strided_slice %1 {offsets = [0, 0], sizes = [1, 5], strides = [1, 1]} : vector<5x5xf32> to vector<1x5xf32>
    %10 = vector.extract_strided_slice %1 {offsets = [1, 0], sizes = [1, 5], strides = [1, 1]} : vector<5x5xf32> to vector<1x5xf32>
    %11 = vector.extract_strided_slice %1 {offsets = [2, 0], sizes = [1, 5], strides = [1, 1]} : vector<5x5xf32> to vector<1x5xf32>
    %12 = vector.extract_strided_slice %1 {offsets = [3, 0], sizes = [1, 5], strides = [1, 1]} : vector<5x5xf32> to vector<1x5xf32>
    %13 = vector.extract_strided_slice %1 {offsets = [4, 0], sizes = [1, 5], strides = [1, 1]} : vector<5x5xf32> to vector<1x5xf32>
    %14 = vector.extract_strided_slice %8 {offsets = [0, 0], sizes = [1, 5], strides = [1, 1]} : vector<6x5xf32> to vector<1x5xf32>
    %15 = math.tanh %14 : vector<1x5xf32>
    %16 = vector.extract_strided_slice %8 {offsets = [1, 0], sizes = [1, 5], strides = [1, 1]} : vector<6x5xf32> to vector<1x5xf32>
    %17 = vector.extract_strided_slice %15 {offsets = [0, 0], sizes = [1, 1], strides = [1, 1]} : vector<1x5xf32> to vector<1x1xf32>
    %18 = vector.broadcast %17 : vector<1x1xf32> to vector<1x5xf32>
    %19 = arith.mulf %18, %9 : vector<1x5xf32>
    %20 = arith.addf %16, %19 : vector<1x5xf32>
    %21 = vector.extract_strided_slice %15 {offsets = [0, 1], sizes = [1, 1], strides = [1, 1]} : vector<1x5xf32> to vector<1x1xf32>
    %22 = vector.broadcast %21 : vector<1x1xf32> to vector<1x5xf32>
    %23 = arith.mulf %22, %10 : vector<1x5xf32>
    %24 = arith.addf %20, %23 : vector<1x5xf32>
    %25 = vector.extract_strided_slice %15 {offsets = [0, 2], sizes = [1, 1], strides = [1, 1]} : vector<1x5xf32> to vector<1x1xf32>
    %26 = vector.broadcast %25 : vector<1x1xf32> to vector<1x5xf32>
    %27 = arith.mulf %26, %11 : vector<1x5xf32>
    %28 = arith.addf %24, %27 : vector<1x5xf32>
    %29 = vector.extract_strided_slice %15 {offsets = [0, 3], sizes = [1, 1], strides = [1, 1]} : vector<1x5xf32> to vector<1x1xf32>
    %30 = vector.broadcast %29 : vector<1x1xf32> to vector<1x5xf32>
    %31 = arith.mulf %30, %12 : vector<1x5xf32>
    %32 = arith.addf %28, %31 : vector<1x5xf32>
    %33 = vector.extract_strided_slice %15 {offsets = [0, 4], sizes = [1, 1], strides = [1, 1]} : vector<1x5xf32> to vector<1x1xf32>
    %34 = vector.broadcast %33 : vector<1x1xf32> to vector<1x5xf32>
    %35 = arith.mulf %34, %13 : vector<1x5xf32>
    %36 = arith.addf %32, %35 : vector<1x5xf32>
    %37 = math.tanh %36 : vector<1x5xf32>
    %38 = vector.extract_strided_slice %8 {offsets = [2, 0], sizes = [1, 5], strides = [1, 1]} : vector<6x5xf32> to vector<1x5xf32>
    %39 = vector.extract_strided_slice %37 {offsets = [0, 0], sizes = [1, 1], strides = [1, 1]} : vector<1x5xf32> to vector<1x1xf32>
    %40 = vector.broadcast %39 : vector<1x1xf32> to vector<1x5xf32>
    %41 = arith.mulf %40, %9 : vector<1x5xf32>
    %42 = arith.addf %38, %41 : vector<1x5xf32>
    %43 = vector.extract_strided_slice %37 {offsets = [0, 1], sizes = [1, 1], strides = [1, 1]} : vector<1x5xf32> to vector<1x1xf32>
    %44 = vector.broadcast %43 : vector<1x1xf32> to vector<1x5xf32>
    %45 = arith.mulf %44, %10 : vector<1x5xf32>
    %46 = arith.addf %42, %45 : vector<1x5xf32>
    %47 = vector.extract_strided_slice %37 {offsets = [0, 2], sizes = [1, 1], strides = [1, 1]} : vector<1x5xf32> to vector<1x1xf32>
    %48 = vector.broadcast %47 : vector<1x1xf32> to vector<1x5xf32>
    %49 = arith.mulf %48, %11 : vector<1x5xf32>
    %50 = arith.addf %46, %49 : vector<1x5xf32>
    %51 = vector.extract_strided_slice %37 {offsets = [0, 3], sizes = [1, 1], strides = [1, 1]} : vector<1x5xf32> to vector<1x1xf32>
    %52 = vector.broadcast %51 : vector<1x1xf32> to vector<1x5xf32>
    %53 = arith.mulf %52, %12 : vector<1x5xf32>
    %54 = arith.addf %50, %53 : vector<1x5xf32>
    %55 = vector.extract_strided_slice %37 {offsets = [0, 4], sizes = [1, 1], strides = [1, 1]} : vector<1x5xf32> to vector<1x1xf32>
    %56 = vector.broadcast %55 : vector<1x1xf32> to vector<1x5xf32>
    %57 = arith.mulf %56, %13 : vector<1x5xf32>
    %58 = arith.addf %54, %57 : vector<1x5xf32>
    %59 = math.tanh %58 : vector<1x5xf32>
    %60 = vector.extract_strided_slice %8 {offsets = [3, 0], sizes = [1, 5], strides = [1, 1]} : vector<6x5xf32> to vector<1x5xf32>
    %61 = vector.extract_strided_slice %59 {offsets = [0, 0], sizes = [1, 1], strides = [1, 1]} : vector<1x5xf32> to vector<1x1xf32>
    %62 = vector.broadcast %61 : vector<1x1xf32> to vector<1x5xf32>
    %63 = arith.mulf %62, %9 : vector<1x5xf32>
    %64 = arith.addf %60, %63 : vector<1x5xf32>
    %65 = vector.extract_strided_slice %59 {offsets = [0, 1], sizes = [1, 1], strides = [1, 1]} : vector<1x5xf32> to vector<1x1xf32>
    %66 = vector.broadcast %65 : vector<1x1xf32> to vector<1x5xf32>
    %67 = arith.mulf %66, %10 : vector<1x5xf32>
    %68 = arith.addf %64, %67 : vector<1x5xf32>
    %69 = vector.extract_strided_slice %59 {offsets = [0, 2], sizes = [1, 1], strides = [1, 1]} : vector<1x5xf32> to vector<1x1xf32>
    %70 = vector.broadcast %69 : vector<1x1xf32> to vector<1x5xf32>
    %71 = arith.mulf %70, %11 : vector<1x5xf32>
    %72 = arith.addf %68, %71 : vector<1x5xf32>
    %73 = vector.extract_strided_slice %59 {offsets = [0, 3], sizes = [1, 1], strides = [1, 1]} : vector<1x5xf32> to vector<1x1xf32>
    %74 = vector.broadcast %73 : vector<1x1xf32> to vector<1x5xf32>
    %75 = arith.mulf %74, %12 : vector<1x5xf32>
    %76 = arith.addf %72, %75 : vector<1x5xf32>
    %77 = vector.extract_strided_slice %59 {offsets = [0, 4], sizes = [1, 1], strides = [1, 1]} : vector<1x5xf32> to vector<1x1xf32>
    %78 = vector.broadcast %77 : vector<1x1xf32> to vector<1x5xf32>
    %79 = arith.mulf %78, %13 : vector<1x5xf32>
    %80 = arith.addf %76, %79 : vector<1x5xf32>
    %81 = math.tanh %80 : vector<1x5xf32>
    %82 = vector.extract_strided_slice %8 {offsets = [4, 0], sizes = [1, 5], strides = [1, 1]} : vector<6x5xf32> to vector<1x5xf32>
    %83 = vector.extract_strided_slice %81 {offsets = [0, 0], sizes = [1, 1], strides = [1, 1]} : vector<1x5xf32> to vector<1x1xf32>
    %84 = vector.broadcast %83 : vector<1x1xf32> to vector<1x5xf32>
    %85 = arith.mulf %84, %9 : vector<1x5xf32>
    %86 = arith.addf %82, %85 : vector<1x5xf32>
    %87 = vector.extract_strided_slice %81 {offsets = [0, 1], sizes = [1, 1], strides = [1, 1]} : vector<1x5xf32> to vector<1x1xf32>
    %88 = vector.broadcast %87 : vector<1x1xf32> to vector<1x5xf32>
    %89 = arith.mulf %88, %10 : vector<1x5xf32>
    %90 = arith.addf %86, %89 : vector<1x5xf32>
    %91 = vector.extract_strided_slice %81 {offsets = [0, 2], sizes = [1, 1], strides = [1, 1]} : vector<1x5xf32> to vector<1x1xf32>
    %92 = vector.broadcast %91 : vector<1x1xf32> to vector<1x5xf32>
    %93 = arith.mulf %92, %11 : vector<1x5xf32>
    %94 = arith.addf %90, %93 : vector<1x5xf32>
    %95 = vector.extract_strided_slice %81 {offsets = [0, 3], sizes = [1, 1], strides = [1, 1]} : vector<1x5xf32> to vector<1x1xf32>
    %96 = vector.broadcast %95 : vector<1x1xf32> to vector<1x5xf32>
    %97 = arith.mulf %96, %12 : vector<1x5xf32>
    %98 = arith.addf %94, %97 : vector<1x5xf32>
    %99 = vector.extract_strided_slice %81 {offsets = [0, 4], sizes = [1, 1], strides = [1, 1]} : vector<1x5xf32> to vector<1x1xf32>
    %100 = vector.broadcast %99 : vector<1x1xf32> to vector<1x5xf32>
    %101 = arith.mulf %100, %13 : vector<1x5xf32>
    %102 = arith.addf %98, %101 : vector<1x5xf32>
    %103 = math.tanh %102 : vector<1x5xf32>
    %104 = vector.extract_strided_slice %8 {offsets = [5, 0], sizes = [1, 5], strides = [1, 1]} : vector<6x5xf32> to vector<1x5xf32>
    %105 = vector.extract_strided_slice %103 {offsets = [0, 0], sizes = [1, 1], strides = [1, 1]} : vector<1x5xf32> to vector<1x1xf32>
    %106 = vector.broadcast %105 : vector<1x1xf32> to vector<1x5xf32>
    %107 = arith.mulf %106, %9 : vector<1x5xf32>
    %108 = arith.addf %104, %107 : vector<1x5xf32>
    %109 = vector.extract_strided_slice %103 {offsets = [0, 1], sizes = [1, 1], strides = [1, 1]} : vector<1x5xf32> to vector<1x1xf32>
    %110 = vector.broadcast %109 : vector<1x1xf32> to vector<1x5xf32>
    %111 = arith.mulf %110, %10 : vector<1x5xf32>
    %112 = arith.addf %108, %111 : vector<1x5xf32>
    %113 = vector.extract_strided_slice %103 {offsets = [0, 2], sizes = [1, 1], strides = [1, 1]} : vector<1x5xf32> to vector<1x1xf32>
    %114 = vector.broadcast %113 : vector<1x1xf32> to vector<1x5xf32>
    %115 = arith.mulf %114, %11 : vector<1x5xf32>
    %116 = arith.addf %112, %115 : vector<1x5xf32>
    %117 = vector.extract_strided_slice %103 {offsets = [0, 3], sizes = [1, 1], strides = [1, 1]} : vector<1x5xf32> to vector<1x1xf32>
    %118 = vector.broadcast %117 : vector<1x1xf32> to vector<1x5xf32>
    %119 = arith.mulf %118, %12 : vector<1x5xf32>
    %120 = arith.addf %116, %119 : vector<1x5xf32>
    %121 = vector.extract_strided_slice %103 {offsets = [0, 4], sizes = [1, 1], strides = [1, 1]} : vector<1x5xf32> to vector<1x1xf32>
    %122 = vector.broadcast %121 : vector<1x1xf32> to vector<1x5xf32>
    %123 = arith.mulf %122, %13 : vector<1x5xf32>
    %124 = arith.addf %120, %123 : vector<1x5xf32>
    %125 = math.tanh %124 : vector<1x5xf32>
    %126 = tpu.concatenate %15, %37, %59, %81, %103, %125 in 0 : vector<1x5xf32>, vector<1x5xf32>, vector<1x5xf32>, vector<1x5xf32>, vector<1x5xf32>, vector<1x5xf32> -> vector<6x5xf32>
    %cst_7 = arith.constant dense<0.000000e+00> : vector<6x5xf32>
    %127 = tpu.matmul %126, %3, %cst_7 {dimension_numbers = #tpu.dot_dimension_numbers<[1], [0], [0], [1], [0, 0, 1, 1], [], []>} : vector<6x5xf32>, vector<5x5xf32>, vector<6x5xf32> -> vector<6x5xf32>
    %128 = vector.broadcast %4 : vector<1x5xf32> to vector<6x5xf32>
    %129 = arith.addf %127, %128 : vector<6x5xf32>
    %cst_8 = arith.constant dense<0xFF800000> : vector<6xf32>
    %130 = vector.multi_reduction <maximumf>, %129, %cst_8 [1] : vector<6x5xf32> to vector<6xf32>
    %131 = vector.shape_cast %130 : vector<6xf32> to vector<6x1xf32>
    %132 = vector.broadcast %131 : vector<6x1xf32> to vector<6x5xf32>
    %133 = arith.subf %129, %132 : vector<6x5xf32>
    %134 = math.exp %133 : vector<6x5xf32>
    %cst_9 = arith.constant dense<0.000000e+00> : vector<6xf32>
    %135 = vector.multi_reduction <add>, %134, %cst_9 [1] : vector<6x5xf32> to vector<6xf32>
    %136 = vector.shape_cast %135 : vector<6xf32> to vector<6x1xf32>
    %137 = math.log %136 : vector<6x1xf32>
    %138 = vector.broadcast %137 : vector<6x1xf32> to vector<6x5xf32>
    %139 = arith.subf %133, %138 : vector<6x5xf32>
    %c0_10 = arith.constant 0 : index
    %c0_11 = arith.constant 0 : index
    %140 = vector.load %arg2[%c0_10, %c0_11] : memref<6x5xf32, #tpu.memory_space<vmem>>, vector<6x5xf32>
    tpu.vector_store %arg2[%c0_10, %c0_11], %139 {strides = array<i32>} : memref<6x5xf32, #tpu.memory_space<vmem>>, vector<6x5xf32>,
    return
  }
}

</mosaic_0001>

<bundles_post_ra>
// kernel: tpu_custom_call.1
= control target key start
LH: loop header
LB: loop body
LE: loop exit
PB: predicated region body
PF: predicated region fallthrough
CT: control target
= control target key end

     0   :  { %vm23_vm0 = vcmask 1044480   ;;  %vm19_vm1 = vcmask 39936   ;;  %s570_s0 = inlined_call_operand.vmem [shape: f32[6,5], index: 0, kind: input, shape index: {}]   ;;  %s571_s1 = inlined_call_operand.vmem [shape: f32[40,5], index: 1, kind: input, shape index: {}]   ;;  %s572_s2 = inlined_call_operand.hbm [shape: f32[6,5], index: 2, kind: output, shape index: {}]  }
   0x1   :  { %v12_v0 = vld [vmem:[%s571_s1] sm:$0x1f] }
   0x2   :  { %v17_v1 = vld [vmem:[%s570_s0] sm:$0x3f]  ;;  %364 = vmatpush.msk.msra.mxu0 %vm23_vm0, %v12_v0 }
   0x3   :  { %365 = vmatmul.msk.f32.vlgmr.msra.gmra.mxu0 %vm19_vm1, %v17_v1 }
   0x4   :  { %7 = vsyncpa [#allocation3], 0  ;;  %v441_v2 = vmov 4   ;;  %v442_v3 = vmov 2   ;;  %v443_v4 = vmov 0   ;;  %v444_v9 = vmov 3  }
   0x5   :  { %378 = vset.pattern.permute.xlu2 %v441_v2  ;;  %376 = vset.pattern.permute.xlu1 %v442_v3  ;;  %v397_v5 = vld [vmem:[%s571_s1 + $0x10] ss:$0 sm:$0xff]  ;;  %v445_v10 = vmov 1   ;;  %v494_v13 = vld [vmem:[%s571_s1 + $0x8] sm:$0x1f]  ;;  %vm298_vm2 = vcmask 1040384  }
   0x6   :  { %374 = vset.pattern.permute.xlu0 %v443_v4  ;;  %v498_v15 = vrot.slane %v494_v13, 2  ;;  %v501_v16 = vrot.slane %v494_v13, 1  ;;  %v85_v18 = vrot.slane %v494_v13, 3  ;;  %v96_v21 = vrot.slane %v494_v13, 4  ;;  %s446_s20 = smov [#allocation2]   ;;  %s355_s23 = sshll.u32 %s572_s2, 4  ;;  %s356_s23 = int_to_ptr.hbm [resolvable:$true] %s355_s23 }
   0x7   :  { %v515_v38 = vrot.slane %v494_v13, 7  ;;  %vm300_vm3 = vcmask 1041408   ;;  %v529_v62 = vrot.slane %v494_v13, 6  ;;  %vm302_vm4 = vcmask 1042432   ;;  %s353_s21 = sshll.u32 %s446_s20, 4  ;;  %s354_s21 = int_to_ptr.vmem [resolvable:$true] %s353_s21 }
   0x8   :  { %vm304_vm5 = vcmask 1043456   ;;  %vm334_vm6 = vcmask 37888  }
  0x80   :  { %v44_v6 = vpop.f32.mrf.mxu0 }
  0x81   :  { %v476_v7 = vadd.f32 %v397_v5, %v44_v6 }
  0x83   :  { %399 = vtanh.f32 %v476_v7 }
  0x89   :  { %v479_v8 = vpop.eup %399 }
  0x8a   :  { %93 = vperm.xlu2 %378, %v479_v8   ;;  %71 = vperm.xlu1 %376, %v479_v8  }
  0x8b   :  { %50 = vperm.xlu0 %374, %v479_v8  }
  0x92   :  { %377 = vset.pattern.permute.xlu1 %v444_v9  ;;  %379 = vset.pattern.permute.xlu2 %v443_v4 }
  0x93   :  { %375 = vset.pattern.permute.xlu0 %v445_v10  ;;  %82 = vperm.xlu1 %377, %v479_v8  }
  0x94   :  { %59 = vperm.xlu0 %375, %v479_v8  }
  0x9b   :  { %380 = vset.pattern.permute.xlu1 %v445_v10 }
  0x9c   :  { %382 = vset.pattern.permute.xlu0 %v444_v9 }
  0xe4   :  { %v94_v24 = vpop.permute.xlu2 %93 }
  0xe5   :  { %v98_v28 = vmul.f32 %v96_v21, %v94_v24 }
  0xe7   :  { %v100_v33 = vrot.slane %v98_v28, 7 }
  0xfc   :  { %v72_v11 = vpop.permute.xlu1 %71 }
  0xfd   :  { %v51_v12 = vpop.permute.xlu0 %50  ;;  %v76_v22 = vmul.f32 %v498_v15, %v72_v11 }
  0xfe   :  { %v53_v14 = vmul.f32 %v51_v12, %v494_v13 }
  0xff   :  { %v78_v29 = vrot.slane %v76_v22, 7 }
 0x100   :  { %v55_v17 = vrot.slane %v53_v14, 7 }
 0x102   :  { %v57_v25 = vadd.f32 %v55_v17, %v476_v7 }
 0x105   :  { %v83_v19 = vpop.permute.xlu1 %82 }
 0x106   :  { %v60_v20 = vpop.permute.xlu0 %59  ;;  %v87_v26 = vmul.f32 %v85_v18, %v83_v19 }
 0x107   :  { %v65_v23 = vmul.f32 %v501_v16, %v60_v20 }
 0x108   :  { %v89_v31 = vrot.slane %v87_v26, 7 }
 0x109   :  { %v67_v27 = vrot.slane %v65_v23, 7 }
 0x10b   :  { %v69_v30 = vadd.f32 %v67_v27, %v57_v25 }
 0x10d   :  { %v80_v32 = vadd.f32 %v78_v29, %v69_v30 }
 0x10f   :  { %v91_v34 = vadd.f32 %v89_v31, %v80_v32 }
 0x111   :  { %v102_v35 = vadd.f32 %v100_v33, %v91_v34 }
 0x113   :  { %401 = vtanh.f32 %v102_v35 }
 0x119   :  { %v402_v36 = vpop.eup %401 }
 0x11a   :  { %135 = vperm.xlu0 %382, %v402_v36   ;;  %117 = vperm.xlu1 %380, %v402_v36   ;;  %v299_v59 = vsel %vm298_vm2, %v479_v8, %v402_v36 }
 0x11b   :  { %106 = vperm.xlu2 %379, %v402_v36  }
 0x122   :  { %383 = vset.pattern.permute.xlu1 %v441_v2 }
 0x123   :  { %381 = vset.pattern.permute.xlu2 %v442_v3  ;;  %144 = vperm.xlu1 %383, %v402_v36  }
 0x124   :  { %126 = vperm.xlu2 %381, %v402_v36  }
 0x12b   :  { %385 = vset.pattern.permute.xlu1 %v445_v10 }
 0x12c   :  { %384 = vset.pattern.permute.xlu2 %v443_v4 }
 0x175   :  { %v107_v37 = vpop.permute.xlu2 %106 }
 0x176   :  { %v111_v39 = vmul.f32 %v515_v38, %v107_v37 }
 0x178   :  { %v113_v40 = vrot.slane %v111_v39, 7 }
 0x17a   :  { %v115_v45 = vadd.f32 %v113_v40, %v476_v7 }
 0x17e   :  { %v127_v41 = vpop.permute.xlu2 %126 }
 0x17f   :  { %v129_v44 = vmul.f32 %v127_v41, %v501_v16 }
 0x181   :  { %v131_v49 = vrot.slane %v129_v44, 7 }
 0x18c   :  { %v118_v42 = vpop.permute.xlu1 %117  ;;  %v136_v46 = vpop.permute.xlu0 %135 }
 0x18d   :  { %v120_v43 = vmul.f32 %v118_v42, %v494_v13  ;;  %v138_v50 = vmul.f32 %v136_v46, %v498_v15 }
 0x18f   :  { %v122_v47 = vrot.slane %v120_v43, 7  ;;  %v140_v53 = vrot.slane %v138_v50, 7 }
 0x191   :  { %v124_v48 = vadd.f32 %v122_v47, %v115_v45 }
 0x193   :  { %v133_v51 = vadd.f32 %v131_v49, %v124_v48 }
 0x195   :  { %v145_v52 = vpop.permute.xlu1 %144  ;;  %v142_v55 = vadd.f32 %v140_v53, %v133_v51 }
 0x196   :  { %v147_v54 = vmul.f32 %v145_v52, %v85_v18 }
 0x198   :  { %v149_v56 = vrot.slane %v147_v54, 7 }
 0x19a   :  { %v151_v57 = vadd.f32 %v149_v56, %v142_v55 }
 0x19c   :  { %403 = vtanh.f32 %v151_v57 }
 0x1a2   :  { %v404_v58 = vpop.eup %403 }
 0x1a3   :  { %184 = vperm.xlu0 %382, %v404_v58   ;;  %166 = vperm.xlu1 %385, %v404_v58   ;;  %v301_v60 = vsel %vm300_vm3, %v299_v59, %v404_v58 }
 0x1a4   :  { %155 = vperm.xlu2 %384, %v404_v58  }
 0x1ab   :  { %387 = vset.pattern.permute.xlu1 %v441_v2  ;;  %389 = vset.pattern.permute.xlu0 %v445_v10 }
 0x1ac   :  { %386 = vset.pattern.permute.xlu2 %v442_v3  ;;  %193 = vperm.xlu1 %387, %v404_v58  }
 0x1ad   :  { %175 = vperm.xlu2 %386, %v404_v58  }
 0x1b4   :  { %390 = vset.pattern.permute.xlu1 %v442_v3 }
 0x1b5   :  { %388 = vset.pattern.permute.xlu2 %v443_v4 }
 0x1fe   :  { %v156_v61 = vpop.permute.xlu2 %155 }
 0x1ff   :  { %v160_v63 = vmul.f32 %v529_v62, %v156_v61 }
 0x201   :  { %v162_v0 = vrot.slane %v160_v63, 7 }
 0x203   :  { %v164_v10 = vadd.f32 %v162_v0, %v476_v7 }
 0x207   :  { %v176_v1 = vpop.permute.xlu2 %175 }
 0x208   :  { %v178_v8 = vmul.f32 %v176_v1, %v494_v13 }
 0x20a   :  { %v180_v17 = vrot.slane %v178_v8, 7 }
 0x215   :  { %v167_v5 = vpop.permute.xlu1 %166  ;;  %v185_v11 = vpop.permute.xlu0 %184 }
 0x216   :  { %v169_v6 = vmul.f32 %v167_v5, %v515_v38  ;;  %v187_v18 = vmul.f32 %v185_v11, %v501_v16 }
 0x218   :  { %v171_v12 = vrot.slane %v169_v6, 7  ;;  %v189_v22 = vrot.slane %v187_v18, 7 }
 0x21a   :  { %v173_v14 = vadd.f32 %v171_v12, %v164_v10 }
 0x21c   :  { %v182_v19 = vadd.f32 %v180_v17, %v173_v14 }
 0x21e   :  { %v194_v20 = vpop.permute.xlu1 %193  ;;  %v191_v24 = vadd.f32 %v189_v22, %v182_v19 }
 0x21f   :  { %v196_v23 = vmul.f32 %v194_v20, %v498_v15  ;;  %v207_v15 = vrot.slane %v494_v13, 5 }
 0x221   :  { %v198_v25 = vrot.slane %v196_v23, 7 }
 0x223   :  { %v200_v26 = vadd.f32 %v198_v25, %v191_v24 }
 0x225   :  { %405 = vtanh.f32 %v200_v26 }
 0x22b   :  { %v406_v27 = vpop.eup %405 }
 0x22c   :  { %224 = vperm.xlu1 %390, %v406_v27   ;;  %215 = vperm.xlu0 %389, %v406_v27   ;;  %v303_v28 = vsel %vm302_vm4, %v301_v60, %v406_v27 }
 0x22d   :  { %204 = vperm.xlu2 %388, %v406_v27  }
 0x234   :  { %392 = vset.pattern.permute.xlu1 %v441_v2 }
 0x235   :  { %391 = vset.pattern.permute.xlu2 %v444_v9  ;;  %242 = vperm.xlu1 %392, %v406_v27  }
 0x236   :  { %233 = vperm.xlu2 %391, %v406_v27  }
 0x23d   :  { %394 = vset.pattern.permute.xlu1 %v442_v3 }
 0x23e   :  { %393 = vset.pattern.permute.xlu2 %v443_v4 }
 0x287   :  { %v205_v29 = vpop.permute.xlu2 %204 }
 0x288   :  { %v209_v30 = vmul.f32 %v207_v15, %v205_v29 }
 0x28a   :  { %v211_v31 = vrot.slane %v209_v30, 7 }
 0x28c   :  { %v213_v36 = vadd.f32 %v211_v31, %v476_v7 }
 0x290   :  { %v234_v37 = vpop.permute.xlu2 %233 }
 0x291   :  { %v236_v3 = vmul.f32 %v234_v37, %v494_v13 }
 0x293   :  { %v238_v43 = vrot.slane %v236_v3, 7 }
 0x29e   :  { %v225_v32 = vpop.permute.xlu1 %224  ;;  %v216_v33 = vpop.permute.xlu0 %215 }
 0x29f   :  { %v218_v34 = vmul.f32 %v216_v33, %v529_v62  ;;  %v227_v35 = vmul.f32 %v225_v32, %v515_v38 }
 0x2a1   :  { %v220_v39 = vrot.slane %v218_v34, 7  ;;  %v229_v41 = vrot.slane %v227_v35, 7 }
 0x2a3   :  { %v222_v40 = vadd.f32 %v220_v39, %v213_v36 }
 0x2a5   :  { %v231_v4 = vadd.f32 %v229_v41, %v222_v40 }
 0x2a7   :  { %v243_v42 = vpop.permute.xlu1 %242  ;;  %v240_v45 = vadd.f32 %v238_v43, %v231_v4 }
 0x2a8   :  { %v245_v44 = vmul.f32 %v243_v42, %v501_v16  ;;  %v15_v16 = vld [vmem:[%s571_s1 + $0x18] sm:$0x1f] }
 0x2a9   :  { %366 = vmatpush.msk.msra.mxu1 %vm23_vm0, %v15_v16 }
 0x2aa   :  { %v247_v46 = vrot.slane %v245_v44, 7 }
 0x2ac   :  { %v249_v47 = vadd.f32 %v247_v46, %v240_v45 }
 0x2ae   :  { %407 = vtanh.f32 %v249_v47 }
 0x2b4   :  { %v408_v48 = vpop.eup %407 }
 0x2b5   :  { %271 = vperm.xlu1 %394, %v408_v48   ;;  %262 = vperm.xlu0 %389, %v408_v48   ;;  %v305_v49 = vsel %vm304_vm5, %v303_v28, %v408_v48 }
 0x2b6   :  { %253 = vperm.xlu2 %393, %v408_v48  }
 0x2bd   :  { %396 = vset.pattern.permute.xlu0 %v441_v2 }
 0x2be   :  { %395 = vset.pattern.permute.xlu2 %v444_v9  ;;  %289 = vperm.xlu0 %396, %v408_v48  }
 0x2bf   :  { %280 = vperm.xlu2 %395, %v408_v48  }
 0x310   :  { %v254_v50 = vpop.permute.xlu2 %253 }
 0x311   :  { %v256_v51 = vmul.f32 %v254_v50, %v96_v21 }
 0x313   :  { %v258_v52 = vrot.slane %v256_v51, 7 }
 0x315   :  { %v260_v9 = vadd.f32 %v258_v52, %v476_v7  ;;  %v398_v7 = vld [vmem:[%s571_s1 + $0x20] ss:$0 sm:$0xff] }
 0x319   :  { %v281_v56 = vpop.permute.xlu2 %280 }
 0x31a   :  { %v283_v59 = vmul.f32 %v281_v56, %v515_v38 }
 0x31c   :  { %v285_v0 = vrot.slane %v283_v59, 7 }
 0x327   :  { %v272_v53 = vpop.permute.xlu1 %271  ;;  %v263_v54 = vpop.permute.xlu0 %262 }
 0x328   :  { %v265_v55 = vmul.f32 %v263_v54, %v207_v15  ;;  %v274_v2 = vmul.f32 %v272_v53, %v529_v62 }
 0x32a   :  { %v267_v57 = vrot.slane %v265_v55, 7  ;;  %v276_v60 = vrot.slane %v274_v2, 7 }
 0x32c   :  { %v269_v58 = vadd.f32 %v267_v57, %v260_v9 }
 0x32e   :  { %v278_v61 = vadd.f32 %v276_v60, %v269_v58 }
 0x330   :  { %v290_v63 = vpop.permute.xlu0 %289  ;;  %v287_v21 = vadd.f32 %v285_v0, %v278_v61 }
 0x331   :  { %v292_v1 = vmul.f32 %v290_v63, %v494_v13 }
 0x333   :  { %v294_v5 = vrot.slane %v292_v1, 7 }
 0x335   :  { %v296_v6 = vadd.f32 %v294_v5, %v287_v21 }
 0x337   :  { %409 = vtanh.f32 %v296_v6 }
 0x33d   :  { %v410_v8 = vpop.eup %409 }
 0x33e   :  { %v306_v62 = vsel %vm23_vm0, %v305_v49, %v410_v8 }
 0x33f   :  { %367 = vmatmul.msk.f32.vlgmr.msra.gmra.mxu1 %vm19_vm1, %v306_v62 }
 0x3bc   :  { %v331_v38 = vpop.f32.mrf.mxu1 }
 0x3bd   :  { %v332_v10 = vadd.f32 %v398_v7, %v331_v38 }
 0x3bf   :  { %v335_v11 = vsel %vm334_vm6, %v332_v10, -inf }
 0x3c0   :  { %336 = vmax.xlane.f32.xlu1 %v335_v11 }
 0x433   :  { %v337_v13 = vpop.xlane.xlu1 %336 }
 0x434   :  { %v338_v12 = vsub.f32 %v332_v10, %v337_v13 }
 0x436   :  { %v339_v14 = vmul.f32 1.442695, %v338_v12 }
 0x438   :  { %411 = vpow2.f32 %v339_v14 }
 0x43e   :  { %v412_v17 = vpop.eup %411 }
 0x43f   :  { %v341_v18 = vsel %vm334_vm6, %v412_v17, 0.0 }
 0x440   :  { %342 = vadd.xlane.f32.xlu2 %v341_v18 }
 0x4b3   :  { %v343_v19 = vpop.xlane.xlu2 %342 }
 0x4b4   :  { %413 = vlog2.f32 %v343_v19 }
 0x4ba   :  { %v414_v20 = vpop.eup %413 }
 0x4bb   :  { %v345_v22 = vmul.f32 0.6931472, %v414_v20 }
 0x4bd   :  { %v346_v23 = vsub.f32 %v338_v12, %v345_v22 }
 0x4bf   :  { %347 = vst.msk [vmem:[#allocation2] sm:$0x3f] %vm334_vm6, %v346_v23 }
 0x4c0   :  { %358 = dma.vmem_to_hbm [thread:$0]  %s354_s21, 128, %s356_s23, [#allocation3]  }
 0x4c1   :  { %439 = dma.done.wait [#allocation3], 128  }
 0x4c2   :  { %440 = vsyncadd [#allocation3], 4294967168 }
 0x4c3   :  { %363 = vsyncpa [#allocation3], 1 }

</bundles_post_ra>
